<compile_context>
chip_gen: v7x
topology: tpu7x:2x2x1
jax: 0.10.0
libtpu: 0.0.40
codegen_flags: <defaults>
</compile_context>

<pallas_src>
import functools

import jax
import jax.numpy as jnp
from jax import lax
from jax.experimental import pallas as pl
from jax.experimental.pallas import tpu as pltpu


def basic_block_kernel(mask_ref, w1_ref, b1_ref, w2_ref, b2_ref, x_ref, out_ref, *,
                       img_w):
    """One image per grid step.

    mask_ref : (9*C, H*W) bf16  0/1 validity mask per 3x3 tap (padding=1 semantics)
    w*_ref   : (C, 9*C)   bf16  BN-scale-folded conv weights; entry [c_out, (kh*3+kw)*C+c_in]
                                 == w_hwio[kh, kw, c_in, c_out] * bn_scale[c_out]
    b*_ref   : (C, 1)     f32   folded BN bias (beta - mean * scale)
    x_ref    : (1, C, H*W) bf16 flattened NCHW input image
    out_ref  : (1, C, H*W) f32  flattened NCHW output image
    """
    P = x_ref.shape[2]                        # H * W  (lane dim, multiple of 128)

    mask = mask_ref[...]                      # (9C, P) bf16, 0/1

    def conv3x3(act, w_ref):
        # act: (C, P) f32.  Tap (kh, kw) needs act[c, p + s], s = (kh-1)*W + (kw-1).
        # Implemented as a static lane-slice of [act ‖ act] (== lane rotate / pltpu.roll
        # by -s): no sublane-crossing slice+reshape, no padded scratch.  Out-of-image /
        # row-wrapped positions are zeroed by `mask`.  The 9 shifted copies are stacked
        # along sublanes (8-row aligned pieces) into a single (9C, P) operand so the
        # whole conv is ONE K-fused MXU matmul instead of 9 tiny K=C dots.
        wide = jnp.concatenate([act, act], axis=1)           # (C, 2P)
        pieces = []
        for kh in range(3):
            for kw in range(3):
                s = (kh - 1) * img_w + (kw - 1)
                start = s % P                                # static, in [0, P)
                pieces.append(wide[:, start:start + P])      # (C, P)
        lhs = jnp.concatenate(pieces, axis=0)                # (9C, P) f32
        lhs = lhs.astype(jnp.bfloat16) * mask                # bf16 MXU operand, masked
        return jnp.dot(w_ref[...], lhs,                      # (C, 9C) x (9C, P)
                       preferred_element_type=jnp.float32)   # -> (C, P) f32

    x = x_ref[0].astype(jnp.float32)                         # (C, P): conv1 input + residual

    h = conv3x3(x, w1_ref)
    h = jnp.maximum(h + b1_ref[...], 0.0)                    # bn1 (folded) + relu

    o = conv3x3(h, w2_ref)
    o = jnp.maximum(o + b2_ref[...] + x, 0.0)                # bn2 + residual + relu

    out_ref[0] = o.astype(out_ref.dtype)                     # lane-dense (C, H*W) store


def fold_bn(gamma, beta, mean, var, eps=1e-5):
    scale = gamma / jnp.sqrt(var + eps)
    bias = beta - mean * scale
    return scale, bias


def _tap_masks(H, W, C):
    """(9*C, H*W) 0/1 bf16 mask: row (kh*3+kw)*C + c, column i*W + j is 1 iff tap
    (kh, kw) applied at output pixel (i, j) reads a real pixel (3x3 conv, padding=1)."""
    ii = jnp.arange(H * W) // W
    jj = jnp.arange(H * W) % W
    rows = []
    for kh in range(3):
        for kw in range(3):
            dh, dw = kh - 1, kw - 1
            valid = ((ii + dh >= 0) & (ii + dh < H) &
                     (jj + dw >= 0) & (jj + dw < W)).astype(jnp.bfloat16)
            rows.append(jnp.broadcast_to(valid, (C, H * W)))
    return jnp.concatenate(rows, axis=0)


@jax.jit
def basic_block_forward(x_nchw, w1_hwio, g1, be1, m1, v1, w2_hwio, g2, be2, m2, v2):
    B, C, H, W = x_nchw.shape

    # Fold BN (eval mode) into the conv weights + a per-channel bias (free, trace time).
    s1, b1 = fold_bn(g1, be1, m1, v1)
    s2, b2 = fold_bn(g2, be2, m2, v2)
    w1t = (w1_hwio * s1).reshape(9 * C, C).T.astype(jnp.bfloat16)    # (C, 9C)
    w2t = (w2_hwio * s2).reshape(9 * C, C).T.astype(jnp.bfloat16)    # (C, 9C)
    b1c = b1.reshape(C, 1).astype(jnp.float32)
    b2c = b2.reshape(C, 1).astype(jnp.float32)

    mask9 = _tap_masks(H, W, C)                                      # (9C, H*W) bf16
    x_flat = x_nchw.astype(jnp.bfloat16).reshape(B, C, H * W)        # free reshape, no pad

    # TODO(synk): stride>1 / dilation>1 and the optional `downsample` branch of
    # BasicBlock are not implemented (this config is stride=1, dilation=1, downsample=None).
    # For large images, add a grid axis over H*W strips (lane-dim tiles, multiples of
    # 8*128) with per-strip tap masks to bound VMEM (v7x: 64 MiB) and vreg live ranges.
    out_flat = pl.pallas_call(
        functools.partial(basic_block_kernel, img_w=W),
        out_shape=jax.ShapeDtypeStruct((B, C, H * W), jnp.float32),
        grid_spec=pltpu.PrefetchScalarGridSpec(
            num_scalar_prefetch=0,
            grid=(B,),
            in_specs=[
                pl.BlockSpec((9 * C, H * W), lambda b: (0, 0)),      # tap masks
                pl.BlockSpec((C, 9 * C), lambda b: (0, 0)),          # w1 (folded, transposed)
                pl.BlockSpec((C, 1), lambda b: (0, 0)),              # b1
                pl.BlockSpec((C, 9 * C), lambda b: (0, 0)),          # w2 (folded, transposed)
                pl.BlockSpec((C, 1), lambda b: (0, 0)),              # b2
                pl.BlockSpec((1, C, H * W), lambda b: (b, 0, 0)),    # x
            ],
            out_specs=pl.BlockSpec((1, C, H * W), lambda b: (b, 0, 0)),
        ),
        compiler_params=pltpu.CompilerParams(
            dimension_semantics=("parallel",),        # batch axis feeds both v7x TCs
            vmem_limit_bytes=32 * 1024 * 1024,        # explicit budget (safe on v7x 64 MiB)
        ),
    )(mask9, w1t, b1c, w2t, b2c, x_flat)

    return out_flat.reshape(B, C, H, W)


def reference_forward(x_nchw, w1_hwio, g1, be1, m1, v1, w2_hwio, g2, be2, m2, v2):
    """Pure-JAX reference mirroring the kernel's numerics (bf16 inputs/weights,
    f32 accumulation, bf16 intermediate activation)."""
    s1, b1 = fold_bn(g1, be1, m1, v1)
    s2, b2 = fold_bn(g2, be2, m2, v2)
    xq = x_nchw.astype(jnp.bfloat16).astype(jnp.float32)
    w1q = (w1_hwio * s1).astype(jnp.bfloat16).astype(jnp.float32)
    w2q = (w2_hwio * s2).astype(jnp.bfloat16).astype(jnp.float32)

    x_nhwc = jnp.transpose(xq, (0, 2, 3, 1))
    dn = lax.conv_dimension_numbers(x_nhwc.shape, w1q.shape, ("NHWC", "HWIO", "NHWC"))
    h = lax.conv_general_dilated(x_nhwc, w1q, (1, 1), ((1, 1), (1, 1)),
                                 dimension_numbers=dn, precision=lax.Precision.HIGHEST)
    h = jnp.maximum(h + b1, 0.0)
    h = h.astype(jnp.bfloat16).astype(jnp.float32)
    o = lax.conv_general_dilated(h, w2q, (1, 1), ((1, 1), (1, 1)),
                                 dimension_numbers=dn, precision=lax.Precision.HIGHEST)
    o = jnp.maximum(o + b2 + x_nhwc, 0.0)
    return jnp.transpose(o, (0, 3, 1, 2))


if __name__ == "__main__":
    # BasicBlock(inplanes=8, planes=8, stride=1, downsample=None) at a small spatial size.
    B, C, H, W = 2, 8, 16, 16

    key = jax.random.PRNGKey(0)
    (k_x, k_w1, k_w2, k_g1, k_b1, k_m1, k_v1,
     k_g2, k_b2, k_m2, k_v2) = jax.random.split(key, 11)

    # PyTorch-style NCHW input.
    x = jax.random.normal(k_x, (B, C, H, W), dtype=jnp.float32)

    # Conv weights in HWIO (= PyTorch OIHW transposed (2, 3, 1, 0)); bias=False as in conv3x3.
    w1 = 0.1 * jax.random.normal(k_w1, (3, 3, C, C), dtype=jnp.float32)
    w2 = 0.1 * jax.random.normal(k_w2, (3, 3, C, C), dtype=jnp.float32)
    g1 = 1.0 + 0.1 * jax.random.normal(k_g1, (C,), dtype=jnp.float32)
    be1 = 0.1 * jax.random.normal(k_b1, (C,), dtype=jnp.float32)
    m1 = 0.1 * jax.random.normal(k_m1, (C,), dtype=jnp.float32)
    v1 = jnp.abs(jax.random.normal(k_v1, (C,), dtype=jnp.float32)) + 0.5
    g2 = 1.0 + 0.1 * jax.random.normal(k_g2, (C,), dtype=jnp.float32)
    be2 = 0.1 * jax.random.normal(k_b2, (C,), dtype=jnp.float32)
    m2 = 0.1 * jax.random.normal(k_m2, (C,), dtype=jnp.float32)
    v2 = jnp.abs(jax.random.normal(k_v2, (C,), dtype=jnp.float32)) + 0.5

    out = basic_block_forward(x, w1, g1, be1, m1, v1, w2, g2, be2, m2, v2)
    out = jax.block_until_ready(out)

    ref = reference_forward(x, w1, g1, be1, m1, v1, w2, g2, be2, m2, v2)
    ref = jax.block_until_ready(ref)

    assert out.shape == (B, C, H, W)
    assert jnp.allclose(out, ref, atol=1e-3, rtol=1e-3), "mismatch vs pure-JAX reference"

    print("KERNEL_OK")
</pallas_src>

<mosaic_0001>
module attributes {stable_mosaic.version = 11 : i64} {
  func.func @basic_block_kernel(%arg0: i32, %arg1: memref<72x256xbf16, #tpu.memory_space<vmem>>, %arg2: memref<8x72xbf16, #tpu.memory_space<vmem>>, %arg3: memref<8x1xf32, #tpu.memory_space<vmem>>, %arg4: memref<8x72xbf16, #tpu.memory_space<vmem>>, %arg5: memref<8x1xf32, #tpu.memory_space<vmem>>, %arg6: memref<1x8x256xbf16, #tpu.memory_space<vmem>>, %arg7: memref<1x8x256xf32, #tpu.memory_space<vmem>>) attributes {dimension_semantics = [#tpu.dimension_semantics<parallel>], iteration_bounds = array<i64: 2>, scalar_prefetch = 0 : i64, scratch_operands = 0 : i64, tpu.core_type = #tpu.core_type<tc>, window_params = [{pipeline_mode = #tpu.pipeline_mode<synchronous>, transform_indices = @transform_0, window_bounds = array<i64: 72, 256>}, {pipeline_mode = #tpu.pipeline_mode<synchronous>, transform_indices = @transform_1, window_bounds = array<i64: 8, 72>}, {pipeline_mode = #tpu.pipeline_mode<synchronous>, transform_indices = @transform_2, window_bounds = array<i64: 8, 1>}, {pipeline_mode = #tpu.pipeline_mode<synchronous>, transform_indices = @transform_3, window_bounds = array<i64: 8, 72>}, {pipeline_mode = #tpu.pipeline_mode<synchronous>, transform_indices = @transform_4, window_bounds = array<i64: 8, 1>}, {transform_indices = @transform_5, window_bounds = array<i64: 1, 8, 256>}, {transform_indices = @transform_6, window_bounds = array<i64: 1, 8, 256>}]} {
    %c0 = arith.constant 0 : index
    %c0_0 = arith.constant 0 : index
    %0 = vector.load %arg1[%c0, %c0_0] : memref<72x256xbf16, #tpu.memory_space<vmem>>, vector<72x256xbf16>
    %c0_1 = arith.constant 0 : index
    %c0_2 = arith.constant 0 : index
    %c0_3 = arith.constant 0 : index
    %1 = vector.load %arg6[%c0_1, %c0_2, %c0_3] : memref<1x8x256xbf16, #tpu.memory_space<vmem>>, vector<1x8x256xbf16>
    %2 = vector.shape_cast %1 : vector<1x8x256xbf16> to vector<8x256xbf16>
    %3 = arith.extf %2 : vector<8x256xbf16> to vector<8x256xf32>
    %4 = tpu.concatenate %3, %3 in 1 : vector<8x256xf32>, vector<8x256xf32> -> vector<8x512xf32>
    %5 = vector.extract_strided_slice %4 {offsets = [0, 239], sizes = [8, 256], strides = [1, 1]} : vector<8x512xf32> to vector<8x256xf32>
    %6 = vector.extract_strided_slice %4 {offsets = [0, 240], sizes = [8, 256], strides = [1, 1]} : vector<8x512xf32> to vector<8x256xf32>
    %7 = vector.extract_strided_slice %4 {offsets = [0, 241], sizes = [8, 256], strides = [1, 1]} : vector<8x512xf32> to vector<8x256xf32>
    %8 = vector.extract_strided_slice %4 {offsets = [0, 255], sizes = [8, 256], strides = [1, 1]} : vector<8x512xf32> to vector<8x256xf32>
    %9 = vector.extract_strided_slice %4 {offsets = [0, 0], sizes = [8, 256], strides = [1, 1]} : vector<8x512xf32> to vector<8x256xf32>
    %10 = vector.extract_strided_slice %4 {offsets = [0, 1], sizes = [8, 256], strides = [1, 1]} : vector<8x512xf32> to vector<8x256xf32>
    %11 = vector.extract_strided_slice %4 {offsets = [0, 15], sizes = [8, 256], strides = [1, 1]} : vector<8x512xf32> to vector<8x256xf32>
    %12 = vector.extract_strided_slice %4 {offsets = [0, 16], sizes = [8, 256], strides = [1, 1]} : vector<8x512xf32> to vector<8x256xf32>
    %13 = vector.extract_strided_slice %4 {offsets = [0, 17], sizes = [8, 256], strides = [1, 1]} : vector<8x512xf32> to vector<8x256xf32>
    %14 = tpu.concatenate %5, %6, %7, %8, %9, %10, %11, %12, %13 in 0 : vector<8x256xf32>, vector<8x256xf32>, vector<8x256xf32>, vector<8x256xf32>, vector<8x256xf32>, vector<8x256xf32>, vector<8x256xf32>, vector<8x256xf32>, vector<8x256xf32> -> vector<72x256xf32>
    %15 = arith.truncf %14 : vector<72x256xf32> to vector<72x256xbf16>
    %16 = arith.mulf %15, %0 : vector<72x256xbf16>
    %c0_4 = arith.constant 0 : index
    %c0_5 = arith.constant 0 : index
    %17 = vector.load %arg2[%c0_4, %c0_5] : memref<8x72xbf16, #tpu.memory_space<vmem>>, vector<8x72xbf16>
    %cst = arith.constant dense<0.000000e+00> : vector<8x256xf32>
    %18 = tpu.matmul %17, %16, %cst {dimension_numbers = #tpu.dot_dimension_numbers<[1], [0], [0], [1], [0, 0, 1, 1], [], []>} : vector<8x72xbf16>, vector<72x256xbf16>, vector<8x256xf32> -> vector<8x256xf32>
    %c0_6 = arith.constant 0 : index
    %c0_7 = arith.constant 0 : index
    %19 = vector.load %arg3[%c0_6, %c0_7] : memref<8x1xf32, #tpu.memory_space<vmem>>, vector<8x1xf32>
    %20 = vector.broadcast %19 : vector<8x1xf32> to vector<8x256xf32>
    %21 = arith.addf %18, %20 : vector<8x256xf32>
    %cst_8 = arith.constant 0.000000e+00 : f32
    %22 = vector.broadcast %cst_8 : f32 to vector<8x256xf32>
    %23 = arith.maximumf %21, %22 : vector<8x256xf32>
    %24 = tpu.concatenate %23, %23 in 1 : vector<8x256xf32>, vector<8x256xf32> -> vector<8x512xf32>
    %25 = vector.extract_strided_slice %24 {offsets = [0, 239], sizes = [8, 256], strides = [1, 1]} : vector<8x512xf32> to vector<8x256xf32>
    %26 = vector.extract_strided_slice %24 {offsets = [0, 240], sizes = [8, 256], strides = [1, 1]} : vector<8x512xf32> to vector<8x256xf32>
    %27 = vector.extract_strided_slice %24 {offsets = [0, 241], sizes = [8, 256], strides = [1, 1]} : vector<8x512xf32> to vector<8x256xf32>
    %28 = vector.extract_strided_slice %24 {offsets = [0, 255], sizes = [8, 256], strides = [1, 1]} : vector<8x512xf32> to vector<8x256xf32>
    %29 = vector.extract_strided_slice %24 {offsets = [0, 0], sizes = [8, 256], strides = [1, 1]} : vector<8x512xf32> to vector<8x256xf32>
    %30 = vector.extract_strided_slice %24 {offsets = [0, 1], sizes = [8, 256], strides = [1, 1]} : vector<8x512xf32> to vector<8x256xf32>
    %31 = vector.extract_strided_slice %24 {offsets = [0, 15], sizes = [8, 256], strides = [1, 1]} : vector<8x512xf32> to vector<8x256xf32>
    %32 = vector.extract_strided_slice %24 {offsets = [0, 16], sizes = [8, 256], strides = [1, 1]} : vector<8x512xf32> to vector<8x256xf32>
    %33 = vector.extract_strided_slice %24 {offsets = [0, 17], sizes = [8, 256], strides = [1, 1]} : vector<8x512xf32> to vector<8x256xf32>
    %34 = tpu.concatenate %25, %26, %27, %28, %29, %30, %31, %32, %33 in 0 : vector<8x256xf32>, vector<8x256xf32>, vector<8x256xf32>, vector<8x256xf32>, vector<8x256xf32>, vector<8x256xf32>, vector<8x256xf32>, vector<8x256xf32>, vector<8x256xf32> -> vector<72x256xf32>
    %35 = arith.truncf %34 : vector<72x256xf32> to vector<72x256xbf16>
    %36 = arith.mulf %35, %0 : vector<72x256xbf16>
    %c0_9 = arith.constant 0 : index
    %c0_10 = arith.constant 0 : index
    %37 = vector.load %arg4[%c0_9, %c0_10] : memref<8x72xbf16, #tpu.memory_space<vmem>>, vector<8x72xbf16>
    %cst_11 = arith.constant dense<0.000000e+00> : vector<8x256xf32>
    %38 = tpu.matmul %37, %36, %cst_11 {dimension_numbers = #tpu.dot_dimension_numbers<[1], [0], [0], [1], [0, 0, 1, 1], [], []>} : vector<8x72xbf16>, vector<72x256xbf16>, vector<8x256xf32> -> vector<8x256xf32>
    %c0_12 = arith.constant 0 : index
    %c0_13 = arith.constant 0 : index
    %39 = vector.load %arg5[%c0_12, %c0_13] : memref<8x1xf32, #tpu.memory_space<vmem>>, vector<8x1xf32>
    %40 = vector.broadcast %39 : vector<8x1xf32> to vector<8x256xf32>
    %41 = arith.addf %38, %40 : vector<8x256xf32>
    %42 = arith.addf %41, %3 : vector<8x256xf32>
    %cst_14 = arith.constant 0.000000e+00 : f32
    %43 = vector.broadcast %cst_14 : f32 to vector<8x256xf32>
    %44 = arith.maximumf %42, %43 : vector<8x256xf32>
    %c0_15 = arith.constant 0 : index
    %c0_16 = arith.constant 0 : index
    %c0_17 = arith.constant 0 : index
    %45 = vector.load %arg7[%c0_15, %c0_16, %c0_17] : memref<1x8x256xf32, #tpu.memory_space<vmem>>, vector<1x8x256xf32>
    %46 = vector.shape_cast %45 : vector<1x8x256xf32> to vector<8x256xf32>
    %47 = vector.shape_cast %44 : vector<8x256xf32> to vector<1x8x256xf32>
    tpu.vector_store %arg7[%c0_15, %c0_16, %c0_17], %47 {strides = array<i32>} : memref<1x8x256xf32, #tpu.memory_space<vmem>>, vector<1x8x256xf32>,
    return
  }
  func.func @transform_0(%arg0: i32) -> (i32, i32) {
    %c0_i32 = arith.constant 0 : i32
    %c0_i32_0 = arith.constant 0 : i32
    %c0_i32_1 = arith.constant 0 : i32
    return %c0_i32, %c0_i32_0 : i32, i32
  }
  func.func @transform_1(%arg0: i32) -> (i32, i32) {
    %c0_i32 = arith.constant 0 : i32
    %c0_i32_0 = arith.constant 0 : i32
    %c0_i32_1 = arith.constant 0 : i32
    return %c0_i32, %c0_i32_0 : i32, i32
  }
  func.func @transform_2(%arg0: i32) -> (i32, i32) {
    %c0_i32 = arith.constant 0 : i32
    %c0_i32_0 = arith.constant 0 : i32
    %c0_i32_1 = arith.constant 0 : i32
    return %c0_i32, %c0_i32_0 : i32, i32
  }
  func.func @transform_3(%arg0: i32) -> (i32, i32) {
    %c0_i32 = arith.constant 0 : i32
    %c0_i32_0 = arith.constant 0 : i32
    %c0_i32_1 = arith.constant 0 : i32
    return %c0_i32, %c0_i32_0 : i32, i32
  }
  func.func @transform_4(%arg0: i32) -> (i32, i32) {
    %c0_i32 = arith.constant 0 : i32
    %c0_i32_0 = arith.constant 0 : i32
    %c0_i32_1 = arith.constant 0 : i32
    return %c0_i32, %c0_i32_0 : i32, i32
  }
  func.func @transform_5(%arg0: i32) -> (i32, i32, i32) {
    %c0_i32 = arith.constant 0 : i32
    %c0_i32_0 = arith.constant 0 : i32
    %c0_i32_1 = arith.constant 0 : i32
    return %arg0, %c0_i32, %c0_i32_0 : i32, i32, i32
  }
  func.func @transform_6(%arg0: i32) -> (i32, i32, i32) {
    %c0_i32 = arith.constant 0 : i32
    %c0_i32_0 = arith.constant 0 : i32
    %c0_i32_1 = arith.constant 0 : i32
    return %arg0, %c0_i32, %c0_i32_0 : i32, i32, i32
  }
}

</mosaic_0001>

<bundles_post_ra>
// kernel: basic_block_forward.1
= control target key start
LH: loop header
LB: loop body
LE: loop exit
PB: predicated region body
PF: predicated region fallthrough
CT: control target
= control target key end

     0   :  { %s1057_s21 = smov 0   ;;  %s1325_s0 = inlined_call_operand.vmem [shape: bf16[72,256], index: 0, kind: input, shape index: {}]   ;;  %s1326_s1 = inlined_call_operand.vmem [shape: bf16[8,72], index: 1, kind: input, shape index: {}]   ;;  %s1327_s2 = inlined_call_operand.vmem [shape: f32[8,1], index: 2, kind: input, shape index: {}]   ;;  %s1328_s3 = inlined_call_operand.vmem [shape: bf16[8,72], index: 3, kind: input, shape index: {}]   ;;  %s1329_s4 = inlined_call_operand.vmem [shape: f32[8,1], index: 4, kind: input, shape index: {}]   ;;  %s1330_s5 = inlined_call_operand.vmem [shape: bf16[2,8,256], index: 5, kind: input, shape index: {}]   ;;  %s1331_s6 = inlined_call_operand.vmem [shape: f32[2,8,256], index: 6, kind: output, shape index: {}]  }
   0x1 LB: > { %s863_s22 = sadd.s32 4294967295, %s1010_s21   ;;  %p867_p0 = scmp.ge.s32.totalorder %s1010_s21, 1  ;;  %s1010_s21 = sphi %s1057_s21, %s16_s21  }
   0x2   : > { %p212_p1 = scmp.lt.s32.totalorder %s1010_s21, 3 }
   0x4   : > { %p213_p2 = pnand %p867_p0, %p212_p1 }
   0x5   : > { %v990_v0 = vld [vmem:[%s1325_s0 + $0x4] ss:$8 sps:$4 sm:$0xff] (!%p213_p2)   ;;  %p242_p3 = scmp.lt.s32.totalorder (!%p213_p2), %s863_s22, 1  ;;  %v992_v1 = vld [vmem:[%s1325_s0] ss:$8 sps:$4 sm:$0xff] (!%p213_p2)   ;;  %s1012_s27 = smov (!%p213_p2), 111  }
   0x6   : > { %216 = sbr.rel (%p213_p2) target bundleno = 1018 (0x3fa), region = 44  ;;  %400 = vrot.lane.b32.xlu1 (!%p213_p2), %v990_v0, %s1012_s27  ;;  %v993_v2 = vld [vmem:[%s1325_s0 + $0x10] ss:$8 sps:$4 sm:$0xff] (!%p213_p2)   ;;  %398 = vrot.lane.b32.xlu0 (!%p213_p2), %v992_v1, %s1012_s27  ;;  %s1013_s10 = smov (!%p213_p2), 127   ;;  %v995_v8 = vld [vmem:[%s1325_s0 + $0x14] ss:$8 sps:$4 sm:$0xff] (!%p213_p2)  }
   0x7   : > { %s1014_s11 = smov (!%p213_p2), 126   ;;  %s1015_s12 = smov (!%p213_p2), 112   ;;  %v996_v9 = vld [vmem:[%s1325_s0 + $0x20] ss:$8 sps:$4 sm:$0xff] (!%p213_p2)   ;;  %v998_v10 = vld [vmem:[%s1325_s0 + $0x24] ss:$8 sps:$4 sm:$0xff] (!%p213_p2)  }
   0x8   : > { %s1016_s17 = smov (!%p213_p2), 110   ;;  %s1017_s18 = smov (!%p213_p2), 96   ;;  %v999_v11 = vld [vmem:[%s1325_s0 + $0x30] ss:$8 sps:$4 sm:$0xff] (!%p213_p2)   ;;  %v261_v12 = vld [vmem:[%s1325_s0 + $0x40] sm:$0xff] (!%p213_p2)  ;;  %vm271_vm0 = vcmask (!%p213_p2), 1039360  }
   0x9   : > { %s1018_s28 = smov (!%p213_p2), 95   ;;  %s1019_s29 = smov (!%p213_p2), 94   ;;  %v1001_v13 = vld [vmem:[%s1325_s0 + $0x34] ss:$8 sps:$4 sm:$0xff] (!%p213_p2)   ;;  %v881_v14 = vcombine.high (!%p213_p2), %v261_v12, %v261_v12  ;;  %v880_v15 = vcombine.low (!%p213_p2), %v261_v12, %v261_v12  ;;  %vm301_vm1 = vcmask (!%p213_p2), 908288   ;;  %vm281_vm2 = vcmask (!%p213_p2), 1031168  }
   0xa   : > { %402 = vrot.lane.b32.xlu1 (!%p213_p2), %v993_v2, %s1012_s27  ;;  %s1020_s8 = smov (!%p213_p2), 17   ;;  %vm291_vm3 = vcmask (!%p213_p2), 916480   ;;  %vm310_vm4 = vcmask (!%p213_p2), 900096   ;;  %vm320_vm5 = vcmask (!%p213_p2), 785408   ;;  %vm330_vm6 = vcmask (!%p213_p2), 777216  }
   0xb   : > { %vm340_vm7 = vcmask (!%p213_p2), 769024   ;;  %vm506_vm8 = vcmask (!%p213_p2), 138240   ;;  %vm529_vm9 = vcmask (!%p213_p2), 1043456   ;;  %vm525_vm10 = vcmask (!%p213_p2), 588800  }
   0xd   : > { %s1333_s22 = smov (!%p242_p3, %s863_s22), 1 }
   0xe   : > { %s888_s30 = sshll.u32 %s1333_s22, 3  ;;  %s889_s16 = sshll.u32 %s1333_s22, 4 }
   0xf   : > { %s246_s9 = scalar_lea.vmem %s1330_s5, %s888_s30  ;;  %s251_s19 = scalar_lea.vmem %s1331_s6, %s889_s16 }
  0x10   : > { %v262_v3 = vld [vmem:[%s246_s9] sm:$0xff] }
  0x11   : > { %v1083_v4 = vunpack.c.l.bf16 %v262_v3  ;;  %v1085_v5 = vunpack.c.h.bf16 %v262_v3 }
  0x13   : > { %v908_v6 = vpack.i.bf16 %v1083_v4, %v1085_v5  ;;  %v923_v7 = vpack.i.bf16 %v1085_v5, %v1083_v4 }
  0x15   : > { %909 = vrot.lane.b32.xlu0 %v908_v6, %s1013_s10  ;;  %914 = vrot.lane.b32.xlu1 %v908_v6, %s1014_s11 }
  0x19   : > { %919 = vrot.lane.b32.xlu0 %v908_v6, %s1015_s12  ;;  %924 = vrot.lane.b32.xlu1 %v923_v7, %s1012_s27 }
  0x1d   : > { %404 = vrot.lane.b32.xlu0 %v995_v8, %s1012_s27  ;;  %406 = vrot.lane.b32.xlu1 %v996_v9, %s1012_s27 }
  0x21   : > { %929 = vrot.lane.b32.xlu0 %v923_v7, %s1016_s17  ;;  %934 = vrot.lane.b32.xlu1 %v923_v7, %s1017_s18 }
  0x25   : > { %408 = vrot.lane.b32.xlu0 %v998_v10, %s1012_s27  ;;  %410 = vrot.lane.b32.xlu1 %v999_v11, %s1012_s27 }
  0x29   : > { %939 = vrot.lane.b32.xlu0 %v923_v7, %s1018_s28  ;;  %944 = vrot.lane.b32.xlu1 %v923_v7, %s1019_s29 }
  0x2d   : > { %412 = vrot.lane.b32.xlu0 %v1001_v13, %s1012_s27  ;;  %416 = vrot.lane.b32.xlu1 %v881_v14, %s1012_s27 }
  0x31   : > { %414 = vrot.lane.b32.xlu0 %v880_v15, %s1012_s27 }
  0x78   : > { %v1124_v16 = vpop.permute.xlu1 %400  ;;  %v1126_v17 = vpop.permute.xlu0 %398 }
  0x79   : > { %v1157_v49 = vsel %vm301_vm1, %v1126_v17, %v1124_v16 }
  0x7c   : > { %v1128_v18 = vpop.permute.xlu1 %402 }
  0x87   : > { %v910_v19 = vpop.permute.xlu0 %909  ;;  %v915_v20 = vpop.permute.xlu1 %914 }
  0x88   : > { %v911_v21 = vunpack.i.l.bf16 %v910_v19  ;;  %v916_v22 = vunpack.i.l.bf16 %v915_v20  ;;  %v912_v32 = vunpack.i.h.bf16 %v910_v19  ;;  %v917_v41 = vunpack.i.h.bf16 %v915_v20 }
  0x8a   : > { %v348_v24 = vpack.c.bf16 %v911_v21, %v1085_v5  ;;  %v273_v37 = vsel %vm271_vm0, %v912_v32, %v911_v21  ;;  %v272_v45 = vsel %vm271_vm0, %v911_v21, %v912_v32  ;;  %v283_v52 = vsel %vm281_vm2, %v917_v41, %v916_v22 }
  0x8b   : > { %v920_v23 = vpop.permute.xlu0 %919  ;;  %v1131_v25 = vpop.permute.xlu1 %924  ;;  %v347_v44 = vpack.c.bf16 %v273_v37, %v1083_v4  ;;  %v346_v55 = vpack.c.bf16 %v272_v45, %v1085_v5  ;;  %v282_v63 = vsel %vm281_vm2, %v916_v22, %v917_v41 }
  0x8c   : > { %v921_v26 = vunpack.i.l.bf16 %v920_v23  ;;  %v441_v27 = vmul.bf16 %v1124_v16, %v348_v24  ;;  %v926_v33 = vunpack.i.l.bf16 %v1131_v25  ;;  %v922_v42 = vunpack.i.h.bf16 %v920_v23 }
  0x8d   : > { %v440_v54 = vmul.bf16 %v1157_v49, %v347_v44  ;;  %v927_v56 = vunpack.i.h.bf16 %v1131_v25  ;;  %v439_v2 = vmul.bf16 %v1126_v17, %v346_v55 }
  0x8e   : > { %v351_v28 = vpack.c.bf16 %v921_v26, %v916_v22  ;;  %480 = vrot.lane.b32.xlu1 %v441_v27, %s1020_s8  ;;  %v293_v53 = vsel %vm291_vm3, %v922_v42, %v921_v26  ;;  %v292_v0 = vsel %vm291_vm3, %v921_v26, %v922_v42 }
  0x8f   : > { %v1135_v29 = vpop.permute.xlu0 %404  ;;  %v1137_v30 = vpop.permute.xlu1 %406  ;;  %v350_v62 = vpack.c.bf16 %v293_v53, %v283_v52  ;;  %v302_v3 = vsel %vm301_vm1, %v926_v33, %v927_v56  ;;  %v349_v12 = vpack.c.bf16 %v292_v0, %v282_v63 }
  0x90   : > { %v444_v31 = vmul.bf16 %v1135_v29, %v351_v28  ;;  %v1173_v1 = vsel %vm301_vm1, %v1128_v18, %v1135_v29 }
  0x91   : > { %v443_v11 = vmul.bf16 %v1173_v1, %v350_v62  ;;  %v442_v23 = vmul.bf16 %v1128_v18, %v349_v12 }
  0x92   : > { %486 = vrot.lane.b32.xlu0 %v444_v31, %s1020_s8 }
  0x93   : > { %v930_v34 = vpop.permute.xlu0 %929  ;;  %v1142_v35 = vpop.permute.xlu1 %934 }
  0x94   : > { %v931_v36 = vunpack.i.l.bf16 %v930_v34  ;;  %v936_v46 = vunpack.i.l.bf16 %v1142_v35  ;;  %v932_v57 = vunpack.i.h.bf16 %v930_v34  ;;  %v937_v7 = vunpack.i.h.bf16 %v1142_v35 }
  0x95   : > { %v1021_v34 = vmov 0  }
  0x96   : > { %v352_v39 = vpack.c.bf16 %v931_v36, %v926_v33  ;;  %v311_v6 = vsel %vm310_vm4, %v931_v36, %v932_v57  ;;  %v312_v13 = vsel %vm310_vm4, %v932_v57, %v931_v36  ;;  %v322_v15 = vsel %vm320_vm5, %v937_v7, %v936_v46  ;;  %568 = vmatprep.mubr.bf16.mxu0 %v1021_v34 }
  0x97   : > { %v1145_v38 = vpop.permute.xlu0 %408  ;;  %v1147_v40 = vpop.permute.xlu1 %410  ;;  %v353_v14 = vpack.c.bf16 %v311_v6, %v302_v3  ;;  %v354_v22 = vpack.c.bf16 %v312_v13, %v927_v56  ;;  %v321_v24 = vsel %vm320_vm5, %v936_v46, %v937_v7  ;;  %948 = vset.pattern.permute.xlu1 %v1021_v34  ;;  %793 = vmatprep.mubr.bf16.mxu1 %v1021_v34 }
  0x98   : > { %v445_v43 = vmul.bf16 %v1137_v30, %v352_v39  ;;  %v1190_v19 = vsel %vm301_vm1, %v1137_v30, %v1145_v38  ;;  %989 = vset.pattern.permute.xlu0 %v1021_v34 }
  0x99   : > { %v446_v27 = vmul.bf16 %v1190_v19, %v353_v14  ;;  %v447_v31 = vmul.bf16 %v1145_v38, %v354_v22 }
  0x9a   : > { %488 = vrot.lane.b32.xlu0 %v445_v43, %s1020_s8 }
  0x9b   : > { %v940_v47 = vpop.permute.xlu0 %939  ;;  %v945_v48 = vpop.permute.xlu1 %944 }
  0x9c   : > { %v941_v50 = vunpack.i.l.bf16 %v940_v47  ;;  %v946_v51 = vunpack.i.l.bf16 %v945_v48  ;;  %v942_v8 = vunpack.i.h.bf16 %v940_v47  ;;  %v947_v21 = vunpack.i.h.bf16 %v945_v48 }
  0x9e   : > { %v355_v58 = vpack.c.bf16 %v941_v50, %v936_v46  ;;  %478 = vrot.lane.b32.xlu0 %v440_v54, %s1020_s8  ;;  %v358_v61 = vpack.c.bf16 %v946_v51, %v946_v51  ;;  %v332_v20 = vsel %vm330_vm6, %v942_v8, %v941_v50  ;;  %v331_v25 = vsel %vm330_vm6, %v941_v50, %v942_v8  ;;  %v455_v46 = vld [vmem:[%s1327_s2] sm:$0xff] }
  0x9f   : > { %v1165_v59 = vpop.permute.xlu0 %412  ;;  %v357_v26 = vpack.c.bf16 %v332_v20, %v322_v15  ;;  %v342_v28 = vsel %vm340_vm7, %v947_v21, %v946_v51  ;;  %v356_v32 = vpack.c.bf16 %v331_v25, %v321_v24  ;;  %v341_v33 = vsel %vm340_vm7, %v946_v51, %v947_v21  ;;  %v1210_v39 = vpop.permute.xlu1 %416  ;;  %v454_v15 = vld [vmem:[%s1326_s1] sm:$0xf] }
  0xa0   : > { %v448_v60 = vmul.bf16 %v1147_v40, %v355_v58  ;;  %v1207_v35 = vsel %vm301_vm1, %v1147_v40, %v1165_v59  ;;  %v360_v37 = vpack.c.bf16 %v342_v28, %v342_v28  ;;  %v359_v42 = vpack.c.bf16 %v341_v33, %v341_v33 }
  0xa1   : > { %v450_v36 = vmul.bf16 %v1165_v59, %v357_v26  ;;  %v449_v41 = vmul.bf16 %v1207_v35, %v356_v32 }
  0xa2   : > { %494 = vrot.lane.b32.xlu1 %v448_v60, %s1020_s8  ;;  %476 = vrot.lane.b32.xlu0 %v439_v2, %s1020_s8  ;;  %v453_v44 = vmul.bf16 %v1210_v39, %v360_v37 }
  0xa3   : > { %v1181_v9 = vpop.permute.xlu0 %414 }
  0xa4   : > { %v451_v10 = vmul.bf16 %v1181_v9, %v358_v61  ;;  %v1218_v43 = vsel %vm301_vm1, %v1181_v9, %v1210_v39 }
  0xa5   : > { %v452_v45 = vmul.bf16 %v1218_v43, %v359_v42 }
  0xa6   : > { %484 = vrot.lane.b32.xlu1 %v443_v11, %s1020_s8  ;;  %500 = vrot.lane.b32.xlu0 %v451_v10, %s1020_s8 }
  0xaa   : > { %482 = vrot.lane.b32.xlu1 %v442_v23, %s1020_s8  ;;  %490 = vrot.lane.b32.xlu0 %v446_v27, %s1020_s8 }
  0xae   : > { %492 = vrot.lane.b32.xlu1 %v447_v31, %s1020_s8  ;;  %498 = vrot.lane.b32.xlu0 %v450_v36, %s1020_s8 }
  0xb2   : > { %496 = vrot.lane.b32.xlu1 %v449_v41, %s1020_s8  ;;  %504 = vrot.lane.b32.xlu0 %v453_v44, %s1020_s8 }
  0xb6   : > { %502 = vrot.lane.b32.xlu1 %v452_v45, %s1020_s8 }
  0xba   : > { %458 = vperm.xlu1 %948, %v455_v46  }
 0x100   : > { %v481_v50 = vpop.permute.xlu1 %480 }
 0x104   : > { %v487_v47 = vpop.permute.xlu0 %486 }
 0x10c   : > { %v489_v48 = vpop.permute.xlu0 %488 }
 0x110   : > { %v479_v51 = vpop.permute.xlu0 %478 }
 0x111   : > { %v508_v52 = vsel %vm506_vm8, %v479_v51, %v481_v50 }
 0x112   : > { %536 = vmatprep.subr.bf16.mxu0 %v508_v52 }
 0x114   : > { %v495_v53 = vpop.permute.xlu1 %494  ;;  %v477_v54 = vpop.permute.xlu0 %476 }
 0x115   : > { %v507_v55 = vsel %vm506_vm8, %v477_v54, %v479_v51 }
 0x116   : > { %537 = vmatpush1.bf16.msra.mxu0 %v507_v55 }
 0x118   : > { %v485_v56 = vpop.permute.xlu1 %484  ;;  %v501_v57 = vpop.permute.xlu0 %500 }
 0x119   : > { %v510_v58 = vsel %vm506_vm8, %v485_v56, %v487_v47 }
 0x11a   : > { %538 = vmatprep.subr.bf16.mxu0 %v510_v58 }
 0x11c   : > { %v483_v60 = vpop.permute.xlu1 %482  ;;  %v491_v61 = vpop.permute.xlu0 %490 }
 0x11d   : > { %v509_v62 = vsel %vm506_vm8, %v483_v60, %v485_v56  ;;  %v511_v3 = vsel %vm506_vm8, %v489_v48, %v491_v61 }
 0x11e   : > { %539 = vmatpush1.bf16.msra.mxu0 %v509_v62 }
 0x120   : > { %v493_v63 = vpop.permute.xlu1 %492  ;;  %v499_v2 = vpop.permute.xlu0 %498 }
 0x121   : > { %v512_v0 = vsel %vm506_vm8, %v491_v61, %v493_v63 }
 0x122   : > { %540 = vmatprep.subr.bf16.mxu0 %v512_v0 }
 0x123   : > { %541 = vmatpush1.bf16.msra.mxu0 %v511_v3 }
 0x124   : > { %v497_v6 = vpop.permute.xlu1 %496  ;;  %v505_v10 = vpop.permute.xlu0 %504 }
 0x125   : > { %v514_v7 = vsel %vm506_vm8, %v497_v6, %v499_v2  ;;  %v513_v8 = vsel %vm506_vm8, %v495_v53, %v497_v6 }
 0x126   : > { %542 = vmatprep.subr.bf16.mxu0 %v514_v7 }
 0x127   : > { %543 = vmatpush1.bf16.msra.mxu0 %v513_v8 }
 0x128   : > { %v503_v11 = vpop.permute.xlu1 %502 }
 0x129   : > { %v515_v12 = vsel %vm506_vm8, %v501_v57, %v503_v11  ;;  %v516_v13 = vsel %vm506_vm8, %v503_v11, %v505_v10 }
 0x12a   : > { %882 = vmatprep.subr.msk.bf16.mxu0 %vm529_vm9, %v516_v13  ;;  %v531_v14 = vsel %vm529_vm9, %v515_v12, 0 }
 0x12b   : > { %545 = vmatpush1.bf16.msra.mxu0 %v531_v14 }
 0x12e   : > { %883 = vmatmul.mubr.msk.bf16.vlgmr.msra.gmra.mrb[0].mxu0 %vm525_vm10, %v454_v15 }
 0x139   : > { %v459_v20 = vpop.permute.xlu1 %458 }
 0x201   : > { %v570_v21 = vpop.f32.mrb[0].mxu0 }
 0x202   : > { %v571_v22 = vadd.f32 %v570_v21, %v459_v20  ;;  %v572_v23 = vpop.f32.mrb[1].mxu0 }
 0x203   : > { %v573_v24 = vadd.f32 %v572_v23, %v459_v20  ;;  %v574_v25 = vpop.f32.mrb[2].mxu0 }
 0x204   : > { %v577_v26 = vmax.f32 %v571_v22, 0.0  ;;  %v575_v27 = vpop.f32.mrb[3].mxu0 }
 0x205   : > { %v578_v28 = vmax.f32 %v573_v24, 0.0 }
 0x207   : > { %v954_v31 = vpack.i.bf16 %v577_v26, %v578_v28  ;;  %v964_v32 = vpack.i.bf16 %v578_v28, %v577_v26 }
 0x209   : > { %955 = vrot.lane.b32.xlu1 %v954_v31, %s1014_s11  ;;  %950 = vrot.lane.b32.xlu0 %v954_v31, %s1013_s10 }
 0x20d   : > { %965 = vrot.lane.b32.xlu1 %v964_v32, %s1012_s27  ;;  %960 = vrot.lane.b32.xlu0 %v954_v31, %s1015_s12 }
 0x211   : > { %975 = vrot.lane.b32.xlu1 %v964_v32, %s1017_s18  ;;  %970 = vrot.lane.b32.xlu0 %v964_v32, %s1016_s17 }
 0x215   : > { %985 = vrot.lane.b32.xlu1 %v964_v32, %s1019_s29  ;;  %980 = vrot.lane.b32.xlu0 %v964_v32, %s1018_s28 }
 0x27b   : > { %v956_v33 = vpop.permute.xlu1 %955  ;;  %v951_v34 = vpop.permute.xlu0 %950 }
 0x27c   : > { %v953_v47 = vunpack.i.h.bf16 %v951_v34  ;;  %v952_v48 = vunpack.i.l.bf16 %v951_v34  ;;  %v957_v50 = vunpack.i.l.bf16 %v956_v33  ;;  %v958_v61 = vunpack.i.h.bf16 %v956_v33 }
 0x27e   : > { %v586_v58 = vsel %vm271_vm0, %v953_v47, %v952_v48  ;;  %v654_v63 = vpack.c.bf16 %v952_v48, %v578_v28  ;;  %v585_v0 = vsel %vm271_vm0, %v952_v48, %v953_v47 }
 0x27f   : > { %v966_v36 = vpop.permute.xlu1 %965  ;;  %v961_v37 = vpop.permute.xlu0 %960  ;;  %v653_v6 = vpack.c.bf16 %v586_v58, %v577_v26  ;;  %v652_v11 = vpack.c.bf16 %v585_v0, %v578_v28 }
 0x280   : > { %v967_v44 = vunpack.i.l.bf16 %v966_v36  ;;  %v962_v45 = vunpack.i.l.bf16 %v961_v37  ;;  %v963_v55 = vunpack.i.h.bf16 %v961_v37  ;;  %v669_v8 = vmul.bf16 %v654_v63, %v1124_v16 }
 0x281   : > { %v668_v14 = vmul.bf16 %v653_v6, %v1157_v49  ;;  %v968_v15 = vunpack.i.h.bf16 %v966_v36  ;;  %v667_v23 = vmul.bf16 %v652_v11, %v1126_v17 }
 0x282   : > { %v657_v57 = vpack.c.bf16 %v962_v45, %v957_v50  ;;  %v604_v2 = vsel %vm291_vm3, %v963_v55, %v962_v45 }
 0x283   : > { %v971_v41 = vpop.permute.xlu0 %970  ;;  %v976_v46 = vpop.permute.xlu1 %975  ;;  %v612_v26 = vsel %vm301_vm1, %v967_v44, %v968_v15 }
 0x284   : > { %v972_v42 = vunpack.i.l.bf16 %v971_v41  ;;  %v977_v53 = vunpack.i.l.bf16 %v976_v46  ;;  %v672_v3 = vmul.bf16 %v657_v57, %v1135_v29  ;;  %v973_v12 = vunpack.i.h.bf16 %v971_v41 }
 0x285   : > { %v594_v29 = vsel %vm281_vm2, %v957_v50, %v958_v61  ;;  %v978_v49 = vunpack.i.h.bf16 %v976_v46 }
 0x286   : > { %v658_v52 = vpack.c.bf16 %v972_v42, %v967_v44  ;;  %v621_v16 = vsel %vm310_vm4, %v973_v12, %v972_v42  ;;  %v620_v25 = vsel %vm310_vm4, %v972_v42, %v973_v12  ;;  %v682_v12 = vld [vmem:[%s1328_s3] sm:$0xf] }
 0x287   : > { %v981_v51 = vpop.permute.xlu0 %980  ;;  %v986_v7 = vpop.permute.xlu1 %985  ;;  %v660_v28 = vpack.c.bf16 %v621_v16, %v968_v15  ;;  %v659_v33 = vpack.c.bf16 %v620_v25, %v612_v26  ;;  %v629_v34 = vsel %vm320_vm5, %v977_v53, %v978_v49  ;;  %v630_v36 = vsel %vm320_vm5, %v978_v49, %v977_v53 }
 0x288   : > { %v982_v54 = vunpack.i.l.bf16 %v981_v51  ;;  %v673_v56 = vmul.bf16 %v658_v52, %v1137_v30  ;;  %v595_v30 = vsel %vm281_vm2, %v958_v61, %v957_v50  ;;  %v987_v13 = vunpack.i.l.bf16 %v986_v7 }
 0x289   : > { %v656_v10 = vpack.c.bf16 %v604_v2, %v595_v30  ;;  %v983_v22 = vunpack.i.h.bf16 %v981_v51  ;;  %v675_v37 = vmul.bf16 %v660_v28, %v1145_v38  ;;  %v674_v41 = vmul.bf16 %v659_v33, %v1190_v19 }
 0x28a   : > { %v661_v60 = vpack.c.bf16 %v982_v54, %v977_v53  ;;  %716 = vrot.lane.b32.xlu0 %v673_v56, %s1020_s8  ;;  %v664_v24 = vpack.c.bf16 %v987_v13, %v987_v13 }
 0x28b   : > { %v671_v20 = vmul.bf16 %v656_v10, %v1173_v1  ;;  %v988_v1 = vunpack.i.h.bf16 %v986_v7  ;;  %v638_v31 = vsel %vm330_vm6, %v982_v54, %v983_v22  ;;  %v639_v17 = vsel %vm330_vm6, %v983_v22, %v982_v54 }
 0x28c   : > { %v676_v62 = vmul.bf16 %v661_v60, %v1147_v40  ;;  %v603_v40 = vsel %vm291_vm3, %v962_v45, %v963_v55  ;;  %v679_v32 = vmul.bf16 %v664_v24, %v1181_v9  ;;  %v663_v42 = vpack.c.bf16 %v639_v17, %v630_v36 }
 0x28d   : > { %v655_v21 = vpack.c.bf16 %v603_v40, %v594_v29  ;;  %v647_v44 = vsel %vm340_vm7, %v987_v13, %v988_v1  ;;  %v648_v9 = vsel %vm340_vm7, %v988_v1, %v987_v13 }
 0x28e   : > { %722 = vrot.lane.b32.xlu1 %v676_v62, %s1020_s8  ;;  %714 = vrot.lane.b32.xlu0 %v672_v3, %s1020_s8  ;;  %v665_v46 = vpack.c.bf16 %v647_v44, %v647_v44  ;;  %v678_v47 = vmul.bf16 %v663_v42, %v1165_v59  ;;  %v666_v48 = vpack.c.bf16 %v648_v9, %v648_v9 }
 0x28f   : > { %v670_v27 = vmul.bf16 %v655_v21, %v1128_v18  ;;  %v662_v18 = vpack.c.bf16 %v638_v31, %v629_v34 }
 0x290   : > { %v680_v38 = vmul.bf16 %v665_v46, %v1218_v43  ;;  %v681_v19 = vmul.bf16 %v666_v48, %v1210_v39 }
 0x291   : > { %v677_v45 = vmul.bf16 %v662_v18, %v1207_v35  ;;  %v683_v35 = vld [vmem:[%s1329_s4] sm:$0xff] }
 0x292   : > { %708 = vrot.lane.b32.xlu1 %v669_v8, %s1020_s8  ;;  %706 = vrot.lane.b32.xlu0 %v668_v14, %s1020_s8 }
 0x296   : > { %712 = vrot.lane.b32.xlu1 %v671_v20, %s1020_s8  ;;  %704 = vrot.lane.b32.xlu0 %v667_v23, %s1020_s8 }
 0x29a   : > { %710 = vrot.lane.b32.xlu1 %v670_v27, %s1020_s8  ;;  %728 = vrot.lane.b32.xlu0 %v679_v32, %s1020_s8 }
 0x29e   : > { %720 = vrot.lane.b32.xlu1 %v675_v37, %s1020_s8  ;;  %718 = vrot.lane.b32.xlu0 %v674_v41, %s1020_s8 }
 0x2a2   : > { %724 = vrot.lane.b32.xlu1 %v677_v45, %s1020_s8  ;;  %726 = vrot.lane.b32.xlu0 %v678_v47, %s1020_s8 }
 0x2a6   : > { %730 = vrot.lane.b32.xlu1 %v680_v38, %s1020_s8  ;;  %732 = vrot.lane.b32.xlu0 %v681_v19, %s1020_s8 }
 0x2aa   : > { %686 = vperm.xlu1 %948, %v683_v35  }
 0x2fc   : > { %v717_v50 = vpop.permute.xlu0 %716 }
 0x300   : > { %v723_v59 = vpop.permute.xlu1 %722  ;;  %v715_v51 = vpop.permute.xlu0 %714 }
 0x304   : > { %v709_v52 = vpop.permute.xlu1 %708  ;;  %v707_v53 = vpop.permute.xlu0 %706 }
 0x305   : > { %v735_v54 = vsel %vm506_vm8, %v707_v53, %v709_v52 }
 0x306   : > { %761 = vmatprep.subr.bf16.mxu1 %v735_v54 }
 0x308   : > { %v713_v43 = vpop.permute.xlu1 %712  ;;  %v705_v55 = vpop.permute.xlu0 %704 }
 0x309   : > { %v737_v39 = vsel %vm506_vm8, %v713_v43, %v715_v51  ;;  %v734_v56 = vsel %vm506_vm8, %v705_v55, %v707_v53 }
 0x30a   : > { %762 = vmatpush1.bf16.msra.mxu1 %v734_v56 }
 0x30b   : > { %763 = vmatprep.subr.bf16.mxu1 %v737_v39 }
 0x30c   : > { %v711_v57 = vpop.permute.xlu1 %710  ;;  %v729_v58 = vpop.permute.xlu0 %728 }
 0x30d   : > { %v736_v60 = vsel %vm506_vm8, %v711_v57, %v713_v43 }
 0x30e   : > { %764 = vmatpush1.bf16.msra.mxu1 %v736_v60 }
 0x310   : > { %v721_v61 = vpop.permute.xlu1 %720  ;;  %v719_v62 = vpop.permute.xlu0 %718 }
 0x311   : > { %v739_v63 = vsel %vm506_vm8, %v719_v62, %v721_v61  ;;  %v738_v0 = vsel %vm506_vm8, %v717_v50, %v719_v62 }
 0x312   : > { %765 = vmatprep.subr.bf16.mxu1 %v739_v63 }
 0x313   : > { %766 = vmatpush1.bf16.msra.mxu1 %v738_v0 }
 0x314   : > { %v725_v2 = vpop.permute.xlu1 %724  ;;  %v727_v3 = vpop.permute.xlu0 %726 }
 0x315   : > { %v740_v6 = vsel %vm506_vm8, %v723_v59, %v725_v2  ;;  %v741_v7 = vsel %vm506_vm8, %v725_v2, %v727_v3 }
 0x316   : > { %767 = vmatprep.subr.bf16.mxu1 %v741_v7 }
 0x317   : > { %768 = vmatpush1.bf16.msra.mxu1 %v740_v6 }
 0x318   : > { %v731_v30 = vpop.permute.xlu1 %730  ;;  %v733_v10 = vpop.permute.xlu0 %732 }
 0x319   : > { %v742_v8 = vsel %vm506_vm8, %v729_v58, %v731_v30  ;;  %v743_v11 = vsel %vm506_vm8, %v731_v30, %v733_v10 }
 0x31a   : > { %v756_v40 = vsel %vm529_vm9, %v742_v8, 0  ;;  %884 = vmatprep.subr.msk.bf16.mxu1 %vm529_vm9, %v743_v11 }
 0x31b   : > { %770 = vmatpush1.bf16.msra.mxu1 %v756_v40 }
 0x31e   : > { %885 = vmatmul.mubr.msk.bf16.vlgmr.msra.gmra.mrb[0].mxu1 %vm525_vm10, %v682_v12 }
 0x329   : > { %v687_v13 = vpop.permute.xlu1 %686 }
 0x3f1   : > { %v795_v14 = vpop.f32.mrb[0].mxu1 }
 0x3f2   : > { %v796_v29 = vadd.f32 %v795_v14, %v687_v13  ;;  %v797_v15 = vpop.f32.mrb[1].mxu1 }
 0x3f3   : > { %v798_v20 = vadd.f32 %v797_v15, %v687_v13  ;;  %v799_v21 = vpop.f32.mrb[2].mxu1 }
 0x3f4   : > { %v802_v16 = vadd.f32 %v796_v29, %v1083_v4  ;;  %v800_v22 = vpop.f32.mrb[3].mxu1 }
 0x3f5   : > { %v803_v23 = vadd.f32 %v798_v20, %v1085_v5 }
 0x3f6   : > { %v804_v24 = vmax.f32 %v802_v16, 0.0 }
 0x3f7   : > { %v805_v25 = vmax.f32 %v803_v23, 0.0 }
 0x3f8   : > { %806 = vst [vmem:[%s251_s19] sm:$0xff] %v804_v24 }
 0x3f9   : > { %807 = vst [vmem:[%s251_s19 + $0x8] sm:$0xff] %v805_v25 }
 0x3fa PF: > { %s16_s21 = sadd.s32 1, %s1010_s21  }
 0x3fb   : > { %p13_p4 = scmp.ge.s32.totalorder %s16_s21, 4  }
 0x3fd   :  { %15 = sbr.rel (!%p13_p4) target bundleno = 1 (0x1), region = 74 }

</bundles_post_ra>
